<compile_context>
chip_gen: v6e
topology: v6e:2x2x1
jax: 0.10.0
libtpu: 0.0.40
codegen_flags: <defaults>
</compile_context>

<pallas_src>
import functools
import math

import jax
import jax.numpy as jnp
from jax import lax
from jax.experimental import pallas as pl
from jax.experimental.pallas import tpu as pltpu


def _round_up(x, m):
    return (x + m - 1) // m * m


def _nbytes(shape, dtype):
    return math.prod(shape) * jnp.dtype(dtype).itemsize


def used_hidden_layer_indices(num_hidden_layers, residual_step):
    """Hidden layers the PyTorch forward actually executes, in application order."""
    if residual_step == 0:
        return list(range(num_hidden_layers))
    used = [0]
    for i in range(1, num_hidden_layers - 2, residual_step):
        used.extend(range(i, i + residual_step - 1))
    return used


# ------------------------------ fused kernel ------------------------------- #
def _mlp_fused_kernel(x_ref, w_in_ref, b_in_ref, hw_ref, hb_ref,
                      w_out_ref, b_out_ref, o_ref,
                      *, num_hidden_layers, residual_step):
    """Entire MLP forward in one kernel.

    x:     (Bp, Dp) f32   flattened, zero-padded input
    w_in:  (Dp, Wp) bf16  input-layer weight (pre-transposed, lane-padded)
    b_in:  (1, Wp)  f32
    hw:    (Lu, Wp, Wp) bf16  USED hidden-layer weights, application order
    hb:    (Lu, 1, Wp)  f32
    w_out: (Wp, Cp) bf16
    b_out: (1, Cp)  f32
    o:     (Bp, Cp) f32
    """
    def linear_relu(h, w, b):
        # bf16 MXU operands, f32 accumulate; bias + ReLU in f32.
        y = jnp.dot(h.astype(jnp.bfloat16), w,
                    preferred_element_type=jnp.float32) + b
        return jnp.maximum(y, 0.0)

    # input layer (Flatten handled in wrapper) + ReLU
    h = linear_relu(x_ref[...].astype(jnp.float32), w_in_ref[...], b_in_ref[...])

    # hidden_layers[0]
    h = linear_relu(h, hw_ref[0], hb_ref[0])

    if residual_step == 0:
        # Mirrors PyTorch exactly: ALL hidden layers (incl. [0] again) re-run.
        def body(l, h):
            return linear_relu(h, hw_ref[l], hb_ref[l])
        h = lax.fori_loop(0, num_hidden_layers, body, h, unroll=True)
    else:
        # Residual path. hw/hb contain only the used layers, packed in
        # application order: [0, block0 chain..., block1 chain..., ...].
        chain_len = residual_step - 1
        num_blocks = len(range(1, num_hidden_layers - 2, residual_step))
        idx = 1
        for _ in range(num_blocks):
            ident = h
            start = idx

            def chain(t, h, start=start):
                return linear_relu(h, hw_ref[start + t], hb_ref[start + t])

            h = lax.fori_loop(0, chain_len, chain, h, unroll=True)
            h = h + ident
            idx += chain_len

    # output layer (no ReLU)
    out = jnp.dot(h.astype(jnp.bfloat16), w_out_ref[...],
                  preferred_element_type=jnp.float32) + b_out_ref[...]
    o_ref[...] = out.astype(o_ref.dtype)


# ------------------------------ Parameters --------------------------------- #
def init_linear(key, in_features, out_features, dtype=jnp.float32):
    """PyTorch nn.Linear default init: U(-1/sqrt(in), 1/sqrt(in)).
    Weight stored pre-transposed as (in, out)."""
    kw, kb = jax.random.split(key)
    bound = 1.0 / math.sqrt(in_features)
    w_t = jax.random.uniform(kw, (in_features, out_features), dtype,
                             minval=-bound, maxval=bound)
    b = jax.random.uniform(kb, (1, out_features), dtype,
                           minval=-bound, maxval=bound)
    return w_t, b


def init_mlp_params(key, input_size, num_hidden_layers, width, num_classes):
    keys = jax.random.split(key, num_hidden_layers + 2)
    return {
        "input": init_linear(keys[0], input_size, width),
        "hidden": [init_linear(keys[1 + i], width, width)
                   for i in range(num_hidden_layers)],
        "output": init_linear(keys[-1], width, num_classes),
    }


def pack_mlp_params(params, input_size, width, num_classes,
                    num_hidden_layers, residual_step,
                    weight_dtype=jnp.bfloat16):
    """Zero-pad to lane-dense (multiples of 128) layout, drop unused hidden
    layers, stack the rest in application order, weights in bf16 / biases f32."""
    Dp = _round_up(input_size, 128)
    Wp = _round_up(width, 128)
    Cp = _round_up(num_classes, 128)

    def pad2(a, shape, dtype):
        return jnp.zeros(shape, dtype).at[:a.shape[0], :a.shape[1]].set(
            a.astype(dtype))

    w_in, b_in = params["input"]
    w_out, b_out = params["output"]

    used = used_hidden_layer_indices(num_hidden_layers, residual_step)
    hw = jnp.stack([params["hidden"][i][0] for i in used])      # (Lu, W, W)
    hb = jnp.stack([params["hidden"][i][1] for i in used])      # (Lu, 1, W)

    return {
        "w_in": pad2(w_in, (Dp, Wp), weight_dtype),
        "b_in": pad2(b_in, (1, Wp), jnp.float32),
        "hw": jnp.zeros((hw.shape[0], Wp, Wp), weight_dtype)
                 .at[:, :width, :width].set(hw.astype(weight_dtype)),
        "hb": jnp.zeros((hb.shape[0], 1, Wp), jnp.float32)
                 .at[:, :, :width].set(hb.astype(jnp.float32)),
        "w_out": pad2(w_out, (Wp, Cp), weight_dtype),
        "b_out": pad2(b_out, (1, Cp), jnp.float32),
    }


# -------------------------------- Forward ----------------------------------- #
@functools.partial(jax.jit, static_argnames=("num_hidden_layers",
                                             "residual_step",
                                             "input_size", "num_classes"))
def mlp_forward(x_nchw, packed, *, num_hidden_layers, residual_step,
                input_size, num_classes):
    """Mirrors MLP.forward (including the residual_step==0 quirk where
    hidden_layers[0] runs twice). One fused pallas_call for the whole net."""
    B = x_nchw.shape[0]
    x = x_nchw.reshape(B, -1)                      # nn.Flatten
    assert x.shape[1] == input_size

    Dp, Wp = packed["w_in"].shape
    Cp = packed["w_out"].shape[1]
    Bp = max(_round_up(B, 8), 8)                   # fill a sublane tile

    xp = jnp.zeros((Bp, Dp), jnp.float32).at[:B, :input_size].set(
        x.astype(jnp.float32))

    # Explicit scoped-VMEM budget from the packed sizes (capped at v7x's
    # 64 MiB physical); covers operands + activation + generous headroom.
    resident = (_nbytes((Bp, Dp), jnp.float32)
                + sum(_nbytes(v.shape, v.dtype) for v in packed.values())
                + _nbytes((Bp, Cp), jnp.float32)
                + 4 * _nbytes((Bp, Wp), jnp.float32))
    vmem_limit = int(min(max(2 * resident + (4 << 20), 16 << 20), 64 << 20))

    kernel = functools.partial(_mlp_fused_kernel,
                               num_hidden_layers=num_hidden_layers,
                               residual_step=residual_step)
    vmem = pl.BlockSpec(memory_space=pltpu.MemorySpace.VMEM)
    out_p = pl.pallas_call(
        kernel,
        out_shape=jax.ShapeDtypeStruct((Bp, Cp), jnp.float32),
        in_specs=[vmem] * 7,
        out_specs=vmem,
        compiler_params=pltpu.CompilerParams(vmem_limit_bytes=vmem_limit),
    )(xp, packed["w_in"], packed["b_in"], packed["hw"], packed["hb"],
      packed["w_out"], packed["b_out"])

    return out_p[:B, :num_classes]


# Pure-JAX reference (unpadded params). matmul_dtype=f32 reproduces the PyTorch
# module exactly; matmul_dtype=bf16 reproduces the kernel's bf16-operand /
# f32-accumulate numerics for a tight check.
def mlp_forward_ref(x_nchw, params, num_hidden_layers, residual_step=0,
                    matmul_dtype=jnp.float32):
    def lin(x, wb, relu):
        w, b = wb
        y = jnp.dot(x.astype(matmul_dtype), w.astype(matmul_dtype),
                    preferred_element_type=jnp.float32) + b
        return jnp.maximum(y, 0.0) if relu else y

    B = x_nchw.shape[0]
    x = x_nchw.reshape(B, -1)
    x = lin(x, params["input"], True)
    hidden = params["hidden"]
    x = lin(x, hidden[0], True)
    if residual_step != 0:
        for i in range(1, num_hidden_layers - 2, residual_step):
            ident = x
            for j in range(i, i + residual_step - 1):
                x = lin(x, hidden[j], True)
            x = x + ident
    else:
        for wb in hidden:
            x = lin(x, wb, True)
    return lin(x, params["output"], False)


# ---------------------------------- Main ------------------------------------ #
if __name__ == "__main__":
    batch, channels, spatial = 2, 4, 16
    input_size = channels * spatial * spatial       # 1024 after Flatten
    width = 32
    num_classes = 10

    key = jax.random.PRNGKey(0)
    k_x, k_p1, k_p2 = jax.random.split(key, 3)
    x = jax.random.normal(k_x, (batch, channels, spatial, spatial), jnp.float32)

    def run_and_check(params, nh, rs):
        packed = pack_mlp_params(params, input_size, width, num_classes, nh, rs)
        out = jax.block_until_ready(
            mlp_forward(x, packed, num_hidden_layers=nh, residual_step=rs,
                        input_size=input_size, num_classes=num_classes))
        assert out.shape == (batch, num_classes)
        # Tight check against a bf16-operand-matched reference (same math).
        ref_bf16 = mlp_forward_ref(x, params, nh, rs, matmul_dtype=jnp.bfloat16)
        assert jnp.allclose(out, ref_bf16, atol=2e-3, rtol=2e-3), \
            f"mismatch vs bf16-matched ref (nh={nh}, rs={rs})"
        # Loose sanity check against the full-f32 PyTorch-equivalent reference.
        ref_f32 = mlp_forward_ref(x, params, nh, rs, matmul_dtype=jnp.float32)
        assert jnp.allclose(out, ref_f32, atol=1e-1, rtol=1e-1), \
            f"mismatch vs f32 ref (nh={nh}, rs={rs})"

    # --- config 1: plain stack (residual_step == 0) -------------------------
    nh1, rs1 = 3, 0
    params1 = init_mlp_params(k_p1, input_size, nh1, width, num_classes)
    run_and_check(params1, nh1, rs1)

    # --- config 2: residual shortcuts (residual_step != 0) ------------------
    nh2, rs2 = 4, 2                                  # (nh-2) % rs == 0, rs < nh
    params2 = init_mlp_params(k_p2, input_size, nh2, width, num_classes)
    run_and_check(params2, nh2, rs2)

    print("KERNEL_OK")
</pallas_src>

<mosaic_0001>
module attributes {stable_mosaic.version = 11 : i64} {
  func.func @_mlp_fused_kernel(%arg0: memref<8x1024xf32, #tpu.memory_space<vmem>>, %arg1: memref<1024x128xbf16, #tpu.memory_space<vmem>>, %arg2: memref<1x128xf32, #tpu.memory_space<vmem>>, %arg3: memref<3x128x128xbf16, #tpu.memory_space<vmem>>, %arg4: memref<3x1x128xf32, #tpu.memory_space<vmem>>, %arg5: memref<128x128xbf16, #tpu.memory_space<vmem>>, %arg6: memref<1x128xf32, #tpu.memory_space<vmem>>, %arg7: memref<8x128xf32, #tpu.memory_space<vmem>>) attributes {dimension_semantics = [], scalar_prefetch = 0 : i64, scratch_operands = 0 : i64, tpu.core_type = #tpu.core_type<tc>} {
    %c0 = arith.constant 0 : index
    %c0_0 = arith.constant 0 : index
    %0 = vector.load %arg0[%c0, %c0_0] : memref<8x1024xf32, #tpu.memory_space<vmem>>, vector<8x1024xf32>
    %c0_1 = arith.constant 0 : index
    %c0_2 = arith.constant 0 : index
    %1 = vector.load %arg1[%c0_1, %c0_2] : memref<1024x128xbf16, #tpu.memory_space<vmem>>, vector<1024x128xbf16>
    %c0_3 = arith.constant 0 : index
    %c0_4 = arith.constant 0 : index
    %2 = vector.load %arg2[%c0_3, %c0_4] : memref<1x128xf32, #tpu.memory_space<vmem>>, vector<1x128xf32>
    %3 = arith.truncf %0 : vector<8x1024xf32> to vector<8x1024xbf16>
    %cst = arith.constant dense<0.000000e+00> : vector<8x128xf32>
    %4 = tpu.matmul %3, %1, %cst {dimension_numbers = #tpu.dot_dimension_numbers<[1], [0], [0], [1], [0, 0, 1, 1], [], []>} : vector<8x1024xbf16>, vector<1024x128xbf16>, vector<8x128xf32> -> vector<8x128xf32>
    %5 = vector.broadcast %2 : vector<1x128xf32> to vector<8x128xf32>
    %6 = arith.addf %4, %5 : vector<8x128xf32>
    %cst_5 = arith.constant 0.000000e+00 : f32
    %7 = vector.broadcast %cst_5 : f32 to vector<8x128xf32>
    %8 = arith.maximumf %6, %7 : vector<8x128xf32>
    %c0_6 = arith.constant 0 : index
    %c0_7 = arith.constant 0 : index
    %c0_8 = arith.constant 0 : index
    %9 = vector.load %arg3[%c0_6, %c0_7, %c0_8] : memref<3x128x128xbf16, #tpu.memory_space<vmem>>, vector<1x128x128xbf16>
    %10 = vector.shape_cast %9 : vector<1x128x128xbf16> to vector<128x128xbf16>
    %c0_9 = arith.constant 0 : index
    %c0_10 = arith.constant 0 : index
    %c0_11 = arith.constant 0 : index
    %11 = vector.load %arg4[%c0_9, %c0_10, %c0_11] : memref<3x1x128xf32, #tpu.memory_space<vmem>>, vector<1x1x128xf32>
    %12 = vector.shape_cast %11 : vector<1x1x128xf32> to vector<1x128xf32>
    %13 = arith.truncf %8 : vector<8x128xf32> to vector<8x128xbf16>
    %cst_12 = arith.constant dense<0.000000e+00> : vector<8x128xf32>
    %14 = tpu.matmul %13, %10, %cst_12 {dimension_numbers = #tpu.dot_dimension_numbers<[1], [0], [0], [1], [0, 0, 1, 1], [], []>} : vector<8x128xbf16>, vector<128x128xbf16>, vector<8x128xf32> -> vector<8x128xf32>
    %15 = vector.broadcast %12 : vector<1x128xf32> to vector<8x128xf32>
    %16 = arith.addf %14, %15 : vector<8x128xf32>
    %cst_13 = arith.constant 0.000000e+00 : f32
    %17 = vector.broadcast %cst_13 : f32 to vector<8x128xf32>
    %18 = arith.maximumf %16, %17 : vector<8x128xf32>
    %c0_i32 = arith.constant 0 : i32
    %19 = arith.index_cast %c0_i32 : i32 to index
    %c0_14 = arith.constant 0 : index
    %c0_15 = arith.constant 0 : index
    %20 = vector.load %arg3[%19, %c0_14, %c0_15] : memref<3x128x128xbf16, #tpu.memory_space<vmem>>, vector<1x128x128xbf16>
    %21 = vector.shape_cast %20 : vector<1x128x128xbf16> to vector<128x128xbf16>
    %22 = arith.index_cast %c0_i32 : i32 to index
    %c0_16 = arith.constant 0 : index
    %c0_17 = arith.constant 0 : index
    %23 = vector.load %arg4[%22, %c0_16, %c0_17] : memref<3x1x128xf32, #tpu.memory_space<vmem>>, vector<1x1x128xf32>
    %24 = vector.shape_cast %23 : vector<1x1x128xf32> to vector<1x128xf32>
    %25 = arith.truncf %18 : vector<8x128xf32> to vector<8x128xbf16>
    %cst_18 = arith.constant dense<0.000000e+00> : vector<8x128xf32>
    %26 = tpu.matmul %25, %21, %cst_18 {dimension_numbers = #tpu.dot_dimension_numbers<[1], [0], [0], [1], [0, 0, 1, 1], [], []>} : vector<8x128xbf16>, vector<128x128xbf16>, vector<8x128xf32> -> vector<8x128xf32>
    %27 = vector.broadcast %24 : vector<1x128xf32> to vector<8x128xf32>
    %28 = arith.addf %26, %27 : vector<8x128xf32>
    %cst_19 = arith.constant 0.000000e+00 : f32
    %29 = vector.broadcast %cst_19 : f32 to vector<8x128xf32>
    %30 = arith.maximumf %28, %29 : vector<8x128xf32>
    %c1_i32 = arith.constant 1 : i32
    %31 = arith.index_cast %c1_i32 : i32 to index
    %c0_20 = arith.constant 0 : index
    %c0_21 = arith.constant 0 : index
    %32 = vector.load %arg3[%31, %c0_20, %c0_21] : memref<3x128x128xbf16, #tpu.memory_space<vmem>>, vector<1x128x128xbf16>
    %33 = vector.shape_cast %32 : vector<1x128x128xbf16> to vector<128x128xbf16>
    %34 = arith.index_cast %c1_i32 : i32 to index
    %c0_22 = arith.constant 0 : index
    %c0_23 = arith.constant 0 : index
    %35 = vector.load %arg4[%34, %c0_22, %c0_23] : memref<3x1x128xf32, #tpu.memory_space<vmem>>, vector<1x1x128xf32>
    %36 = vector.shape_cast %35 : vector<1x1x128xf32> to vector<1x128xf32>
    %37 = arith.truncf %30 : vector<8x128xf32> to vector<8x128xbf16>
    %cst_24 = arith.constant dense<0.000000e+00> : vector<8x128xf32>
    %38 = tpu.matmul %37, %33, %cst_24 {dimension_numbers = #tpu.dot_dimension_numbers<[1], [0], [0], [1], [0, 0, 1, 1], [], []>} : vector<8x128xbf16>, vector<128x128xbf16>, vector<8x128xf32> -> vector<8x128xf32>
    %39 = vector.broadcast %36 : vector<1x128xf32> to vector<8x128xf32>
    %40 = arith.addf %38, %39 : vector<8x128xf32>
    %cst_25 = arith.constant 0.000000e+00 : f32
    %41 = vector.broadcast %cst_25 : f32 to vector<8x128xf32>
    %42 = arith.maximumf %40, %41 : vector<8x128xf32>
    %c2_i32 = arith.constant 2 : i32
    %43 = arith.index_cast %c2_i32 : i32 to index
    %c0_26 = arith.constant 0 : index
    %c0_27 = arith.constant 0 : index
    %44 = vector.load %arg3[%43, %c0_26, %c0_27] : memref<3x128x128xbf16, #tpu.memory_space<vmem>>, vector<1x128x128xbf16>
    %45 = vector.shape_cast %44 : vector<1x128x128xbf16> to vector<128x128xbf16>
    %46 = arith.index_cast %c2_i32 : i32 to index
    %c0_28 = arith.constant 0 : index
    %c0_29 = arith.constant 0 : index
    %47 = vector.load %arg4[%46, %c0_28, %c0_29] : memref<3x1x128xf32, #tpu.memory_space<vmem>>, vector<1x1x128xf32>
    %48 = vector.shape_cast %47 : vector<1x1x128xf32> to vector<1x128xf32>
    %49 = arith.truncf %42 : vector<8x128xf32> to vector<8x128xbf16>
    %cst_30 = arith.constant dense<0.000000e+00> : vector<8x128xf32>
    %50 = tpu.matmul %49, %45, %cst_30 {dimension_numbers = #tpu.dot_dimension_numbers<[1], [0], [0], [1], [0, 0, 1, 1], [], []>} : vector<8x128xbf16>, vector<128x128xbf16>, vector<8x128xf32> -> vector<8x128xf32>
    %51 = vector.broadcast %48 : vector<1x128xf32> to vector<8x128xf32>
    %52 = arith.addf %50, %51 : vector<8x128xf32>
    %cst_31 = arith.constant 0.000000e+00 : f32
    %53 = vector.broadcast %cst_31 : f32 to vector<8x128xf32>
    %54 = arith.maximumf %52, %53 : vector<8x128xf32>
    %c3_i32 = arith.constant 3 : i32
    %55 = arith.truncf %54 : vector<8x128xf32> to vector<8x128xbf16>
    %c0_32 = arith.constant 0 : index
    %c0_33 = arith.constant 0 : index
    %56 = vector.load %arg5[%c0_32, %c0_33] : memref<128x128xbf16, #tpu.memory_space<vmem>>, vector<128x128xbf16>
    %cst_34 = arith.constant dense<0.000000e+00> : vector<8x128xf32>
    %57 = tpu.matmul %55, %56, %cst_34 {dimension_numbers = #tpu.dot_dimension_numbers<[1], [0], [0], [1], [0, 0, 1, 1], [], []>} : vector<8x128xbf16>, vector<128x128xbf16>, vector<8x128xf32> -> vector<8x128xf32>
    %c0_35 = arith.constant 0 : index
    %c0_36 = arith.constant 0 : index
    %58 = vector.load %arg6[%c0_35, %c0_36] : memref<1x128xf32, #tpu.memory_space<vmem>>, vector<1x128xf32>
    %59 = vector.broadcast %58 : vector<1x128xf32> to vector<8x128xf32>
    %60 = arith.addf %57, %59 : vector<8x128xf32>
    %c0_37 = arith.constant 0 : index
    %c0_38 = arith.constant 0 : index
    %61 = vector.load %arg7[%c0_37, %c0_38] : memref<8x128xf32, #tpu.memory_space<vmem>>, vector<8x128xf32>
    tpu.vector_store %arg7[%c0_37, %c0_38], %60 {strides = array<i32>} : memref<8x128xf32, #tpu.memory_space<vmem>>, vector<8x128xf32>,
    return
  }
}

</mosaic_0001>

<bundles_post_ra>
// kernel: mlp_forward.1
= control target key start
LH: loop header
LB: loop body
LE: loop exit
PB: predicated region body
PF: predicated region fallthrough
CT: control target
= control target key end

     0   :  { %12 = vsyncpa [#allocation3], 0  ;;  %s1985_s0 = inlined_call_operand.vmem [shape: f32[8,1024], index: 0, kind: input, shape index: {}]   ;;  %s1986_s1 = inlined_call_operand.hbm [shape: bf16[1024,128], index: 1, kind: input, shape index: {}]   ;;  %s1987_s2 = inlined_call_operand.vmem [shape: f32[1,128], index: 2, kind: input, shape index: {}]   ;;  %s1988_s3 = inlined_call_operand.vmem [shape: bf16[3,128,128], index: 3, kind: input, shape index: {}]   ;;  %s1989_s4 = inlined_call_operand.vmem [shape: f32[3,1,128], index: 4, kind: input, shape index: {}]   ;;  %s1990_s5 = inlined_call_operand.hbm [shape: bf16[128,128], index: 5, kind: input, shape index: {}]   ;;  %s1991_s6 = inlined_call_operand.vmem [shape: f32[1,128], index: 6, kind: input, shape index: {}]   ;;  %s1992_s7 = inlined_call_operand.vmem [shape: f32[8,128], index: 7, kind: output, shape index: {}]  }
   0x1   :  { %13 = vsyncpa [#allocation5], 0  ;;  %s1769_s24 = smov [#allocation2]  }
   0x2   :  { %s21_s25 = sshll.u32 %s1769_s24, 4  ;;  %s22_s25 = int_to_ptr.vmem [resolvable:$true] %s21_s25 }
   0x3   :  { %s1733_s26 = scalar_lea.vmem %s22_s25, 8192  ;;  %p1738_p1 = scmp.lt.s32.totalorder %s22_s25, %s22_s25 }
   0x4   :  { %p1734_p0 = scmp.ne.s32.totalorder %s22_s25, %s1733_s26  ;;  %p1739_p2 = scmp.lt.s32.totalorder %s1733_s26, %s1733_s26 }
   0x6   :  { %p1740_p3 = por %p1739_p2, %p1738_p1 }
   0x8   :  { %p1741_p4 = pnand %p1740_p3, %p1734_p0 }
   0xa   :  { %1744 = shalt.err (!%p1741_p4)
}
   0xb   :  { %s1770_s27 = smov 64   ;;  %s1771_s28 = smov 4  }
   0xc   :  { %27 = dma.hbm_to_vmem [thread:$0]  %s1986_s1, 8192, %s22_s25, [#allocation3], %s1770_s27, %s1770_s27, %s1771_s28  }
   0xd   :  { %s1772_s8 = smov [#allocation4]  }
   0xe   :  { %s39_s9 = sshll.u32 %s1772_s8, 4  ;;  %s40_s9 = int_to_ptr.vmem [resolvable:$true] %s39_s9 }
   0xf   :  { %s1753_s10 = scalar_lea.vmem %s40_s9, 1024  ;;  %p1758_p6 = scmp.lt.s32.totalorder %s40_s9, %s40_s9 }
  0x10   :  { %p1754_p5 = scmp.ne.s32.totalorder %s40_s9, %s1753_s10  ;;  %p1759_p7 = scmp.lt.s32.totalorder %s1753_s10, %s1753_s10 }
  0x12   :  { %p1760_p8 = por %p1759_p7, %p1758_p6 }
  0x14   :  { %p1761_p9 = pnand %p1760_p8, %p1754_p5 }
  0x16   :  { %1764 = shalt.err (!%p1761_p9)
}
  0x17   :  { %45 = dma.hbm_to_vmem [thread:$0]  %s1990_s5, 1024, %s40_s9, [#allocation5], %s1770_s27, %s1770_s27, %s1771_s28  }
  0x18   :  { %1765 = dma.done.wait [#allocation3], 8192  }
  0x19   :  { %1766 = vsyncadd [#allocation3], 4294959104 }
  0x1a   :  { %1767 = dma.done.wait [#allocation5], 1024  }
  0x1b   :  { %1768 = vsyncadd [#allocation5], 4294966272  ;;  %v1629_v0 = vld [vmem:[#allocation2 + $0x78] sm:$0xff]   ;;  %v1633_v4 = vld [vmem:[#allocation2 + $0x70] sm:$0xff]   ;;  %vm1774_vm0 = vmmov 0  }
  0x1c   :  { %v1630_v1 = vld [vmem:[#allocation2 + $0xf8] sm:$0xff]   ;;  %1390 = vmatprep.subr.bf16.mxu0 %v1629_v0  ;;  %v1634_v5 = vld [vmem:[#allocation2 + $0xf0] sm:$0xff]   ;;  %v1637_v8 = vld [vmem:[#allocation2 + $0x68] sm:$0xff]  }
  0x1d   :  { %v1631_v2 = vld [vmem:[#allocation2 + $0x38] sm:$0xff]   ;;  %1412 = vmatprep.subr.bf16.mxu1 %v1630_v1  ;;  %v1635_v6 = vld [vmem:[#allocation2 + $0x30] sm:$0xff]   ;;  %v1638_v9 = vld [vmem:[#allocation2 + $0xe8] sm:$0xff]  }
  0x1e   :  { %v1632_v3 = vld [vmem:[#allocation2 + $0xb8] sm:$0xff]   ;;  %1391 = vmatpush3.bf16.msra.mxu0 %v1631_v2  ;;  %v1636_v7 = vld [vmem:[#allocation2 + $0xb0] sm:$0xff]   ;;  %v1639_v10 = vld [vmem:[#allocation2 + $0x28] sm:$0xff]  }
  0x1f   :  { %1413 = vmatpush3.bf16.msra.mxu1 %v1632_v3  ;;  %1392 = vmatprep.subr.bf16.mxu0 %v1633_v4  ;;  %v1640_v11 = vld [vmem:[#allocation2 + $0xa8] sm:$0xff]   ;;  %v1641_v12 = vld [vmem:[#allocation2 + $0x60] sm:$0xff]   ;;  %v1645_v16 = vld [vmem:[#allocation2 + $0x58] sm:$0xff]  }
  0x20   :  { %1414 = vmatprep.subr.bf16.mxu1 %v1634_v5  ;;  %v1642_v13 = vld [vmem:[#allocation2 + $0xe0] sm:$0xff]   ;;  %v1646_v17 = vld [vmem:[#allocation2 + $0xd8] sm:$0xff]   ;;  %v1649_v20 = vld [vmem:[#allocation2 + $0x50] sm:$0xff]  }
  0x21   :  { %v1643_v14 = vld [vmem:[#allocation2 + $0x20] sm:$0xff]   ;;  %v1647_v18 = vld [vmem:[#allocation2 + $0x18] sm:$0xff]   ;;  %v1650_v21 = vld [vmem:[#allocation2 + $0xd0] sm:$0xff]  }
  0x22   :  { %1393 = vmatpush3.bf16.msra.mxu0 %v1635_v6  ;;  %v1644_v15 = vld [vmem:[#allocation2 + $0xa0] sm:$0xff]   ;;  %v1648_v19 = vld [vmem:[#allocation2 + $0x98] sm:$0xff]   ;;  %v1651_v22 = vld [vmem:[#allocation2 + $0x10] sm:$0xff]  }
  0x23   :  { %1415 = vmatpush3.bf16.msra.mxu1 %v1636_v7  ;;  %1394 = vmatprep.subr.bf16.mxu0 %v1637_v8  ;;  %v1652_v23 = vld [vmem:[#allocation2 + $0x90] sm:$0xff]   ;;  %v1653_v24 = vld [vmem:[#allocation2 + $0x48] sm:$0xff]   ;;  %v1657_v28 = vld [vmem:[#allocation2 + $0x40] sm:$0xff]  }
  0x24   :  { %1416 = vmatprep.subr.bf16.mxu1 %v1638_v9  ;;  %v1654_v25 = vld [vmem:[#allocation2 + $0xc8] sm:$0xff]   ;;  %v1658_v29 = vld [vmem:[#allocation2 + $0xc0] sm:$0xff]   ;;  %v58_v33 = vld [vmem:[%s1985_s0 + $0x18] sm:$0xff] }
  0x25   :  { %v1655_v26 = vld [vmem:[#allocation2 + $0x8] sm:$0xff]   ;;  %v1659_v30 = vld [vmem:[#allocation2] sm:$0xff]   ;;  %v195_v36 = vpack.c.bf16 %v58_v33, %v58_v33  ;;  %v57_v38 = vld [vmem:[%s1985_s0 + $0x10] sm:$0xff] }
  0x26   :  { %1395 = vmatpush3.bf16.msra.mxu0 %v1639_v10  ;;  %v1656_v27 = vld [vmem:[#allocation2 + $0x88] sm:$0xff]   ;;  %v1660_v31 = vld [vmem:[#allocation2 + $0x80] sm:$0xff]   ;;  %v194_v39 = vpack.c.bf16 %v57_v38, %v57_v38  ;;  %v1661_v40 = vld [vmem:[#allocation2 + $0x178] sm:$0xff]  }
  0x27   :  { %1417 = vmatpush3.bf16.msra.mxu1 %v1640_v11  ;;  %1396 = vmatprep.subr.bf16.mxu0 %v1641_v12  ;;  %v56_v32 = vld [vmem:[%s1985_s0 + $0x8] sm:$0xff]  ;;  %v55_v34 = vld [vmem:[%s1985_s0] sm:$0xff]  ;;  %v1662_v41 = vld [vmem:[#allocation2 + $0x1f8] sm:$0xff]  }
  0x28   :  { %1418 = vmatprep.subr.bf16.mxu1 %v1642_v13  ;;  %v193_v35 = vpack.c.bf16 %v56_v32, %v56_v32  ;;  %v192_v37 = vpack.c.bf16 %v55_v34, %v55_v34  ;;  %662 = vmatprep.mubr.bf16.mxu1 %v195_v36  ;;  %v1663_v42 = vld [vmem:[#allocation2 + $0x138] sm:$0xff]   ;;  %v1665_v44 = vld [vmem:[#allocation2 + $0x170] sm:$0xff]   ;;  %v1669_v48 = vld [vmem:[#allocation2 + $0x168] sm:$0xff]  }
  0x29   :  { %v1664_v43 = vld [vmem:[#allocation2 + $0x1b8] sm:$0xff]   ;;  %v1666_v45 = vld [vmem:[#allocation2 + $0x1f0] sm:$0xff]   ;;  %v1670_v49 = vld [vmem:[#allocation2 + $0x1e8] sm:$0xff]  }
  0x2a   :  { %1397 = vmatpush3.bf16.msra.mxu0 %v1643_v14  ;;  %622 = vmatprep.mubr.bf16.mxu0 %v193_v35  ;;  %v1667_v46 = vld [vmem:[#allocation2 + $0x130] sm:$0xff]   ;;  %v1671_v50 = vld [vmem:[#allocation2 + $0x128] sm:$0xff]   ;;  %v1673_v52 = vld [vmem:[#allocation2 + $0x160] sm:$0xff]  }
  0x2b   :  { %1419 = vmatpush3.bf16.msra.mxu1 %v1644_v15  ;;  %1398 = vmatprep.subr.bf16.mxu0 %v1645_v16  ;;  %v1668_v47 = vld [vmem:[#allocation2 + $0x1b0] sm:$0xff]   ;;  %v1672_v51 = vld [vmem:[#allocation2 + $0x1a8] sm:$0xff]   ;;  %v1674_v53 = vld [vmem:[#allocation2 + $0x1e0] sm:$0xff]  }
  0x2c   :  { %1420 = vmatprep.subr.bf16.mxu1 %v1646_v17  ;;  %v1675_v54 = vld [vmem:[#allocation2 + $0x120] sm:$0xff]   ;;  %v1677_v56 = vld [vmem:[#allocation2 + $0x158] sm:$0xff]   ;;  %v1681_v60 = vld [vmem:[#allocation2 + $0x150] sm:$0xff]   ;;  %v1773_v17 = vmov 0.0  }
  0x2d   :  { %v1676_v55 = vld [vmem:[#allocation2 + $0x1a0] sm:$0xff]   ;;  %v1678_v57 = vld [vmem:[#allocation2 + $0x1d8] sm:$0xff]   ;;  %v1682_v61 = vld [vmem:[#allocation2 + $0x1d0] sm:$0xff]  }
  0x2e   :  { %1399 = vmatpush3.bf16.msra.mxu0 %v1647_v18  ;;  %v1679_v58 = vld [vmem:[#allocation2 + $0x118] sm:$0xff]   ;;  %v1683_v62 = vld [vmem:[#allocation2 + $0x110] sm:$0xff]   ;;  %v1685_v0 = vld [vmem:[#allocation2 + $0x148] sm:$0xff]  }
  0x2f   :  { %1421 = vmatpush3.bf16.msra.mxu1 %v1648_v19  ;;  %1400 = vmatprep.subr.bf16.mxu0 %v1649_v20  ;;  %v1680_v59 = vld [vmem:[#allocation2 + $0x198] sm:$0xff]   ;;  %v1684_v63 = vld [vmem:[#allocation2 + $0x190] sm:$0xff]   ;;  %v1686_v1 = vld [vmem:[#allocation2 + $0x1c8] sm:$0xff]  }
  0x30   :  { %1422 = vmatprep.subr.bf16.mxu1 %v1650_v21  ;;  %v1687_v2 = vld [vmem:[#allocation2 + $0x108] sm:$0xff]   ;;  %v1689_v4 = vld [vmem:[#allocation2 + $0x140] sm:$0xff]   ;;  %v62_v9 = vld [vmem:[%s1985_s0 + $0x38] sm:$0xff] }
  0x31   :  { %v1688_v3 = vld [vmem:[#allocation2 + $0x188] sm:$0xff]   ;;  %v1690_v5 = vld [vmem:[#allocation2 + $0x1c0] sm:$0xff]   ;;  %v199_v11 = vpack.c.bf16 %v62_v9, %v62_v9  ;;  %v61_v13 = vld [vmem:[%s1985_s0 + $0x30] sm:$0xff] }
  0x32   :  { %1401 = vmatpush3.bf16.msra.mxu0 %v1651_v22  ;;  %v1691_v6 = vld [vmem:[#allocation2 + $0x100] sm:$0xff]   ;;  %v60_v8 = vld [vmem:[%s1985_s0 + $0x28] sm:$0xff]  ;;  %v198_v15 = vpack.c.bf16 %v61_v13, %v61_v13  ;;  %v1693_v16 = vld [vmem:[%s1988_s3 + $0x38] sm:$0xff]  }
  0x33   :  { %1423 = vmatpush3.bf16.msra.mxu1 %v1652_v23  ;;  %1402 = vmatprep.subr.bf16.mxu0 %v1653_v24  ;;  %v1692_v7 = vld [vmem:[#allocation2 + $0x180] sm:$0xff]   ;;  %v197_v10 = vpack.c.bf16 %v60_v8, %v60_v8  ;;  %v1694_v18 = vld [vmem:[%s1988_s3 + $0x30] sm:$0xff]   ;;  %v1695_v19 = vld [vmem:[%s1988_s3 + $0x28] sm:$0xff]  }
  0x34   :  { %1424 = vmatprep.subr.bf16.mxu1 %v1654_v25  ;;  %v59_v12 = vld [vmem:[%s1985_s0 + $0x20] sm:$0xff]  ;;  %v1697_v21 = vld [vmem:[%s1988_s3 + $0x18] sm:$0xff]   ;;  %v1698_v22 = vld [vmem:[%s1988_s3 + $0x10] sm:$0xff]  }
  0x35   :  { %v196_v14 = vpack.c.bf16 %v59_v12, %v59_v12  ;;  %v1696_v20 = vld [vmem:[%s1988_s3 + $0x20] sm:$0xff]   ;;  %v1699_v23 = vld [vmem:[%s1988_s3 + $0x8] sm:$0xff]   ;;  %v1713_v8 = vld [vmem:[%s1988_s3 + $0x98] sm:$0xff]  }
  0x36   :  { %1403 = vmatpush3.bf16.msra.mxu0 %v1655_v26  ;;  %v1700_v24 = vld [vmem:[%s1988_s3] sm:$0xff]   ;;  %v1714_v9 = vld [vmem:[%s1988_s3 + $0x90] sm:$0xff]  }
  0x37   :  { %1425 = vmatpush3.bf16.msra.mxu1 %v1656_v27  ;;  %1404 = vmatprep.subr.bf16.mxu0 %v1657_v28  ;;  %v1255_v34 = vld [vmem:[%s1987_s2] ss:$0 sm:$0xff] }
  0x38   :  { %1426 = vmatprep.subr.bf16.mxu1 %v1658_v29 }
  0x3a   :  { %1405 = vmatpush3.bf16.msra.mxu0 %v1659_v30 }
  0x3b   :  { %1427 = vmatpush3.bf16.msra.mxu1 %v1660_v31  ;;  %1434 = vmatprep.subr.bf16.mxu0 %v1661_v40 }
  0x3c   :  { %1456 = vmatprep.subr.bf16.mxu1 %v1662_v41 }
  0x3d   :  { %623 = vmatmul.mubr.bf16.vlgmr.msra.gmra.mxu0 %v192_v37 }
  0x3e   :  { %663 = vmatmul.mubr.bf16.vlgmr.msra.gmra.mxu1 %v194_v39  ;;  %1435 = vmatpush3.bf16.msra.mxu0 %v1663_v42 }
  0x3f   :  { %1457 = vmatpush3.bf16.msra.mxu1 %v1664_v43  ;;  %1436 = vmatprep.subr.bf16.mxu0 %v1665_v44 }
  0x40   :  { %1458 = vmatprep.subr.bf16.mxu1 %v1666_v45  ;;  %702 = vmatprep.mubr.bf16.mxu0 %v197_v10 }
  0x41   :  { %742 = vmatprep.mubr.bf16.mxu1 %v199_v11 }
  0x42   :  { %1437 = vmatpush3.bf16.msra.mxu0 %v1667_v46 }
  0x43   :  { %1459 = vmatpush3.bf16.msra.mxu1 %v1668_v47  ;;  %1438 = vmatprep.subr.bf16.mxu0 %v1669_v48 }
  0x44   :  { %1460 = vmatprep.subr.bf16.mxu1 %v1670_v49 }
  0x46   :  { %1439 = vmatpush3.bf16.msra.mxu0 %v1671_v50 }
  0x47   :  { %1461 = vmatpush3.bf16.msra.mxu1 %v1672_v51  ;;  %1440 = vmatprep.subr.bf16.mxu0 %v1673_v52  ;;  %v1701_v52 = vld [vmem:[%s1988_s3 + $0x78] sm:$0xff]  }
  0x48   :  { %1462 = vmatprep.subr.bf16.mxu1 %v1674_v53  ;;  %v1702_v53 = vld [vmem:[%s1988_s3 + $0x70] sm:$0xff]  }
  0x4a   :  { %1441 = vmatpush3.bf16.msra.mxu0 %v1675_v54  ;;  %v1703_v54 = vld [vmem:[%s1988_s3 + $0x68] sm:$0xff]  }
  0x4b   :  { %1463 = vmatpush3.bf16.msra.mxu1 %v1676_v55  ;;  %1442 = vmatprep.subr.bf16.mxu0 %v1677_v56  ;;  %v1704_v55 = vld [vmem:[%s1988_s3 + $0x60] sm:$0xff]   ;;  %v1705_v56 = vld [vmem:[%s1988_s3 + $0x58] sm:$0xff]  }
  0x4c   :  { %1464 = vmatprep.subr.bf16.mxu1 %v1678_v57  ;;  %v1706_v57 = vld [vmem:[%s1988_s3 + $0x50] sm:$0xff]  }
  0x4e   :  { %1443 = vmatpush3.bf16.msra.mxu0 %v1679_v58  ;;  %v1320_v58 = vld [vmem:[%s1989_s4] ss:$0 sm:$0xff] }
  0x4f   :  { %1465 = vmatpush3.bf16.msra.mxu1 %v1680_v59  ;;  %1444 = vmatprep.subr.bf16.mxu0 %v1681_v60 }
  0x50   :  { %1466 = vmatprep.subr.bf16.mxu1 %v1682_v61 }
  0x52   :  { %1445 = vmatpush3.bf16.msra.mxu0 %v1683_v62 }
  0x53   :  { %1467 = vmatpush3.bf16.msra.mxu1 %v1684_v63  ;;  %1446 = vmatprep.subr.bf16.mxu0 %v1685_v0 }
  0x54   :  { %1468 = vmatprep.subr.bf16.mxu1 %v1686_v1 }
  0x56   :  { %1447 = vmatpush3.bf16.msra.mxu0 %v1687_v2  ;;  %v1707_v2 = vld [vmem:[%s1988_s3 + $0x48] sm:$0xff]  }
  0x57   :  { %1469 = vmatpush3.bf16.msra.mxu1 %v1688_v3  ;;  %1448 = vmatprep.subr.bf16.mxu0 %v1689_v4  ;;  %v1708_v3 = vld [vmem:[%s1988_s3 + $0x40] sm:$0xff]   ;;  %v1709_v4 = vld [vmem:[%s1988_s3 + $0xb8] sm:$0xff]  }
  0x58   :  { %1470 = vmatprep.subr.bf16.mxu1 %v1690_v5  ;;  %v1710_v5 = vld [vmem:[%s1988_s3 + $0xb0] sm:$0xff]  }
  0x5a   :  { %1449 = vmatpush3.bf16.msra.mxu0 %v1691_v6  ;;  %v1711_v6 = vld [vmem:[%s1988_s3 + $0xa8] sm:$0xff]  }
  0x5b   :  { %1471 = vmatpush3.bf16.msra.mxu1 %v1692_v7  ;;  %1523 = vmatprep.subr.bf16.mxu0 %v1773_v17  ;;  %v1712_v7 = vld [vmem:[%s1988_s3 + $0xa0] sm:$0xff]  }
  0x5c   :  { %1543 = vmatprep.subr.bf16.mxu1 %v1773_v17 }
  0x5d   :  { %703 = vmatmul.mubr.bf16.vlgmr.msra.gmra.mxu0 %v196_v14 }
  0x5e   :  { %743 = vmatmul.mubr.bf16.vlgmr.msra.gmra.mxu1 %v198_v15  ;;  %1524 = vmatpush3.bf16.msra.mxu0 %v1693_v16 }
  0x5f   :  { %1544 = vmatpush3.bf16.msra.mxu1 %v1693_v16  ;;  %1525 = vmatprep.subr.bf16.mxu0 %v1773_v17 }
  0x60   :  { %1545 = vmatprep.subr.bf16.mxu1 %v1773_v17  ;;  %1539 = vmatprep.mubr.msk.bf16.mxu0 %vm1774_vm0, %v1773_v17 }
  0x61   :  { %1559 = vmatprep.mubr.msk.bf16.mxu1 %vm1774_vm0, %v1773_v17 }
  0x62   :  { %1526 = vmatpush3.bf16.msra.mxu0 %v1694_v18 }
  0x63   :  { %1546 = vmatpush3.bf16.msra.mxu1 %v1694_v18  ;;  %1527 = vmatprep.subr.bf16.mxu0 %v1773_v17  ;;  %v1715_v18 = vld [vmem:[%s1988_s3 + $0x88] sm:$0xff]  }
  0x64   :  { %1547 = vmatprep.subr.bf16.mxu1 %v1773_v17 }
  0x66   :  { %1528 = vmatpush3.bf16.msra.mxu0 %v1695_v19 }
  0x67   :  { %1548 = vmatpush3.bf16.msra.mxu1 %v1695_v19  ;;  %1529 = vmatprep.subr.bf16.mxu0 %v1773_v17  ;;  %v1716_v19 = vld [vmem:[%s1988_s3 + $0x80] sm:$0xff]  }
  0x68   :  { %1549 = vmatprep.subr.bf16.mxu1 %v1773_v17 }
  0x6a   :  { %1530 = vmatpush3.bf16.msra.mxu0 %v1696_v20 }
  0x6b   :  { %1550 = vmatpush3.bf16.msra.mxu1 %v1696_v20  ;;  %1531 = vmatprep.subr.bf16.mxu0 %v1773_v17  ;;  %v1717_v20 = vld [vmem:[#allocation4 + $0x38] sm:$0xff]  }
  0x6c   :  { %1551 = vmatprep.subr.bf16.mxu1 %v1773_v17 }
  0x6e   :  { %1532 = vmatpush3.bf16.msra.mxu0 %v1697_v21 }
  0x6f   :  { %1552 = vmatpush3.bf16.msra.mxu1 %v1697_v21  ;;  %1533 = vmatprep.subr.bf16.mxu0 %v1773_v17  ;;  %v1718_v21 = vld [vmem:[#allocation4 + $0x30] sm:$0xff]  }
  0x70   :  { %1553 = vmatprep.subr.bf16.mxu1 %v1773_v17 }
  0x72   :  { %1534 = vmatpush3.bf16.msra.mxu0 %v1698_v22 }
  0x73   :  { %1554 = vmatpush3.bf16.msra.mxu1 %v1698_v22  ;;  %1535 = vmatprep.subr.bf16.mxu0 %v1773_v17  ;;  %v1719_v22 = vld [vmem:[#allocation4 + $0x28] sm:$0xff]  }
  0x74   :  { %1555 = vmatprep.subr.bf16.mxu1 %v1773_v17 }
  0x76   :  { %1536 = vmatpush3.bf16.msra.mxu0 %v1699_v23 }
  0x77   :  { %1556 = vmatpush3.bf16.msra.mxu1 %v1699_v23  ;;  %1537 = vmatprep.subr.bf16.mxu0 %v1773_v17  ;;  %v1720_v23 = vld [vmem:[#allocation4 + $0x20] sm:$0xff]  }
  0x78   :  { %1557 = vmatprep.subr.bf16.mxu1 %v1773_v17 }
  0x7a   :  { %1538 = vmatpush3.bf16.msra.mxu0 %v1700_v24 }
  0x7b   :  { %1558 = vmatpush3.bf16.msra.mxu1 %v1700_v24  ;;  %1563 = vmatprep.subr.bf16.mxu0 %v1773_v17  ;;  %v1721_v24 = vld [vmem:[#allocation4 + $0x18] sm:$0xff]  }
  0x7c   :  { %1583 = vmatprep.subr.bf16.mxu1 %v1773_v17 }
  0xfd   :  { %v1406_v25 = vpop.f32.mrf.mxu0 }
  0xfe   :  { %v1428_v26 = vpop.f32.mrf.mxu1 }
  0xff   :  { %v1407_v27 = vpop.f32.mrf.mxu0 }
 0x100   :  { %v1429_v28 = vpop.f32.mrf.mxu1  ;;  %v1408_v33 = vadd.f32 %v1407_v27, %v1406_v25  ;;  %v1722_v25 = vld [vmem:[#allocation4 + $0x10] sm:$0xff]  }
 0x101   :  { %v1409_v29 = vpop.f32.mrf.mxu0  ;;  %v1430_v36 = vadd.f32 %v1429_v28, %v1428_v26  ;;  %v1346_v26 = vld [vmem:[%s1989_s4 + $0x1] ss:$0 sm:$0xff] }
 0x102   :  { %v1431_v30 = vpop.f32.mrf.mxu1  ;;  %v625_v35 = vadd.f32 %v1408_v33, %v1255_v34  ;;  %v1723_v34 = vld [vmem:[#allocation4 + $0x8] sm:$0xff]  }
 0x103   :  { %v1410_v31 = vpop.f32.mrf.mxu0 }
 0x104   :  { %v1432_v32 = vpop.f32.mrf.mxu1  ;;  %v665_v40 = vadd.f32 %v1430_v36, %v625_v35  ;;  %v1724_v35 = vld [vmem:[#allocation4] sm:$0xff]  }
 0x105   :  { %v1372_v36 = vld [vmem:[%s1989_s4 + $0x2] ss:$0 sm:$0xff] }
 0x11d   :  { %v1450_v37 = vpop.f32.mrf.mxu0 }
 0x11e   :  { %v1472_v38 = vpop.f32.mrf.mxu1 }
 0x11f   :  { %v1451_v39 = vpop.f32.mrf.mxu0 }
 0x120   :  { %v1452_v41 = vadd.f32 %v1451_v39, %v1450_v37  ;;  %v1473_v42 = vpop.f32.mrf.mxu1 }
 0x121   :  { %v1453_v43 = vpop.f32.mrf.mxu0  ;;  %v1474_v45 = vadd.f32 %v1473_v42, %v1472_v38 }
 0x122   :  { %v705_v44 = vadd.f32 %v1452_v41, %v665_v40  ;;  %v1475_v46 = vpop.f32.mrf.mxu1 }
 0x123   :  { %v1454_v47 = vpop.f32.mrf.mxu0 }
 0x124   :  { %v745_v48 = vadd.f32 %v1474_v45, %v705_v44  ;;  %v1476_v49 = vpop.f32.mrf.mxu1  ;;  %v1381_v44 = vld [vmem:[%s1991_s6] ss:$0 sm:$0xff] }
 0x126   :  { %v750_v50 = vmax.f32 %v745_v48, 0.0 }
 0x128   :  { %v768_v51 = vpack.c.bf16 %v750_v50, %v750_v50 }
 0x12a   :  { %1540 = vmatmul.mubr.bf16.vlgmr.msra.gmra.mxu0 %v768_v51 }
 0x12b   :  { %1579 = vmatprep.mubr.msk.bf16.mxu0 %vm1774_vm0, %v1773_v17  ;;  %1564 = vmatpush3.bf16.msra.mxu0 %v1701_v52 }
 0x12c   :  { %1565 = vmatprep.subr.bf16.mxu0 %v1773_v17 }
 0x12f   :  { %1566 = vmatpush3.bf16.msra.mxu0 %v1702_v53 }
 0x130   :  { %1567 = vmatprep.subr.bf16.mxu0 %v1773_v17 }
 0x133   :  { %1568 = vmatpush3.bf16.msra.mxu0 %v1703_v54 }
 0x134   :  { %1569 = vmatprep.subr.bf16.mxu0 %v1773_v17 }
 0x137   :  { %1570 = vmatpush3.bf16.msra.mxu0 %v1704_v55 }
 0x138   :  { %1571 = vmatprep.subr.bf16.mxu0 %v1773_v17 }
 0x13b   :  { %1572 = vmatpush3.bf16.msra.mxu0 %v1705_v56 }
 0x13c   :  { %1573 = vmatprep.subr.bf16.mxu0 %v1773_v17 }
 0x13f   :  { %1574 = vmatpush3.bf16.msra.mxu0 %v1706_v57 }
 0x140   :  { %1575 = vmatprep.subr.bf16.mxu0 %v1773_v17 }
 0x143   :  { %1576 = vmatpush3.bf16.msra.mxu0 %v1707_v2 }
 0x144   :  { %1577 = vmatprep.subr.bf16.mxu0 %v1773_v17 }
 0x147   :  { %1578 = vmatpush3.bf16.msra.mxu0 %v1708_v3 }
 0x148   :  { %1603 = vmatprep.subr.bf16.mxu0 %v1773_v17 }
 0x1ea   :  { %v857_v59 = vpop.f32.mrf.mxu0 }
 0x1eb   :  { %v858_v60 = vadd.f32 %v1320_v58, %v857_v59 }
 0x1ec   :  { %v1541_v61 = vpop.f32.mrf.mxu0 }
 0x1ed   :  { %v863_v62 = vmax.f32 %v858_v60, 0.0 }
 0x1ee   :  { %v860_v63 = vpop.f32.mrf.mxu0 }
 0x1ef   :  { %v864_v0 = vpack.c.bf16 %v863_v62, %v863_v62 }
 0x1f0   :  { %v1542_v1 = vpop.f32.mrf.mxu0 }
 0x1f1   :  { %1560 = vmatmul.mubr.bf16.vlgmr.msra.gmra.mxu1 %v864_v0 }
 0x1f2   :  { %1599 = vmatprep.mubr.msk.bf16.mxu1 %vm1774_vm0, %v1773_v17  ;;  %1584 = vmatpush3.bf16.msra.mxu1 %v1709_v4 }
 0x1f3   :  { %1585 = vmatprep.subr.bf16.mxu1 %v1773_v17 }
 0x1f6   :  { %1586 = vmatpush3.bf16.msra.mxu1 %v1710_v5 }
 0x1f7   :  { %1587 = vmatprep.subr.bf16.mxu1 %v1773_v17 }
 0x1fa   :  { %1588 = vmatpush3.bf16.msra.mxu1 %v1711_v6 }
 0x1fb   :  { %1589 = vmatprep.subr.bf16.mxu1 %v1773_v17 }
 0x1fe   :  { %1590 = vmatpush3.bf16.msra.mxu1 %v1712_v7 }
 0x1ff   :  { %1591 = vmatprep.subr.bf16.mxu1 %v1773_v17 }
 0x202   :  { %1592 = vmatpush3.bf16.msra.mxu1 %v1713_v8 }
 0x203   :  { %1593 = vmatprep.subr.bf16.mxu1 %v1773_v17 }
 0x206   :  { %1594 = vmatpush3.bf16.msra.mxu1 %v1714_v9 }
 0x207   :  { %1595 = vmatprep.subr.bf16.mxu1 %v1773_v17 }
 0x20a   :  { %1596 = vmatpush3.bf16.msra.mxu1 %v1715_v18 }
 0x20b   :  { %1597 = vmatprep.subr.bf16.mxu1 %v1773_v17 }
 0x20e   :  { %1598 = vmatpush3.bf16.msra.mxu1 %v1716_v19 }
 0x2b1   :  { %v899_v10 = vpop.f32.mrf.mxu1 }
 0x2b2   :  { %v900_v11 = vadd.f32 %v1320_v58, %v899_v10 }
 0x2b3   :  { %v1561_v12 = vpop.f32.mrf.mxu1 }
 0x2b4   :  { %v905_v13 = vmax.f32 %v900_v11, 0.0 }
 0x2b5   :  { %v902_v14 = vpop.f32.mrf.mxu1 }
 0x2b6   :  { %v925_v15 = vpack.c.bf16 %v905_v13, %v905_v13 }
 0x2b7   :  { %v1562_v16 = vpop.f32.mrf.mxu1 }
 0x2b8   :  { %1580 = vmatmul.mubr.bf16.vlgmr.msra.gmra.mxu0 %v925_v15 }
 0x2b9   :  { %1619 = vmatprep.mubr.msk.bf16.mxu0 %vm1774_vm0, %v1773_v17  ;;  %1604 = vmatpush3.bf16.msra.mxu0 %v1717_v20 }
 0x2ba   :  { %1605 = vmatprep.subr.bf16.mxu0 %v1773_v17 }
 0x2bd   :  { %1606 = vmatpush3.bf16.msra.mxu0 %v1718_v21 }
 0x2be   :  { %1607 = vmatprep.subr.bf16.mxu0 %v1773_v17 }
 0x2c1   :  { %1608 = vmatpush3.bf16.msra.mxu0 %v1719_v22 }
 0x2c2   :  { %1609 = vmatprep.subr.bf16.mxu0 %v1773_v17 }
 0x2c5   :  { %1610 = vmatpush3.bf16.msra.mxu0 %v1720_v23 }
 0x2c6   :  { %1611 = vmatprep.subr.bf16.mxu0 %v1773_v17 }
 0x2c9   :  { %1612 = vmatpush3.bf16.msra.mxu0 %v1721_v24 }
 0x2ca   :  { %1613 = vmatprep.subr.bf16.mxu0 %v1773_v17 }
 0x2cd   :  { %1614 = vmatpush3.bf16.msra.mxu0 %v1722_v25 }
 0x2ce   :  { %1615 = vmatprep.subr.bf16.mxu0 %v1773_v17 }
 0x2d1   :  { %1616 = vmatpush3.bf16.msra.mxu0 %v1723_v34 }
 0x2d2   :  { %1617 = vmatprep.subr.bf16.mxu0 %v1773_v17 }
 0x2d5   :  { %1618 = vmatpush3.bf16.msra.mxu0 %v1724_v35 }
 0x378   :  { %v1014_v27 = vpop.f32.mrf.mxu0 }
 0x379   :  { %v1015_v28 = vadd.f32 %v1346_v26, %v1014_v27 }
 0x37a   :  { %v1581_v29 = vpop.f32.mrf.mxu0 }
 0x37b   :  { %v1020_v30 = vmax.f32 %v1015_v28, 0.0 }
 0x37c   :  { %v1017_v31 = vpop.f32.mrf.mxu0 }
 0x37d   :  { %v1040_v32 = vpack.c.bf16 %v1020_v30, %v1020_v30 }
 0x37e   :  { %v1582_v33 = vpop.f32.mrf.mxu0 }
 0x37f   :  { %1600 = vmatmul.mubr.bf16.vlgmr.msra.gmra.mxu1 %v1040_v32 }
 0x43f   :  { %v1129_v37 = vpop.f32.mrf.mxu1 }
 0x440   :  { %v1130_v38 = vadd.f32 %v1372_v36, %v1129_v37 }
 0x441   :  { %v1601_v39 = vpop.f32.mrf.mxu1 }
 0x442   :  { %v1135_v40 = vmax.f32 %v1130_v38, 0.0 }
 0x443   :  { %v1132_v41 = vpop.f32.mrf.mxu1 }
 0x444   :  { %v1136_v42 = vpack.c.bf16 %v1135_v40, %v1135_v40 }
 0x445   :  { %v1602_v43 = vpop.f32.mrf.mxu1 }
 0x446   :  { %1620 = vmatmul.mubr.bf16.vlgmr.msra.gmra.mxu0 %v1136_v42 }
 0x506   :  { %v1242_v45 = vpop.f32.mrf.mxu0 }
 0x507   :  { %v1243_v17 = vadd.f32 %v1381_v44, %v1242_v45 }
 0x508   :  { %v1621_v46 = vpop.f32.mrf.mxu0 }
 0x509   :  { %1248 = vst [vmem:[%s1992_s7] sm:$0xff] %v1243_v17 }
 0x50a   :  { %v1245_v47 = vpop.f32.mrf.mxu0 }
 0x50c   :  { %v1622_v48 = vpop.f32.mrf.mxu0 }
 0x50d   :  { %1253 = vsyncpa [#allocation3], 1 }
 0x50e   :  { %1254 = vsyncpa [#allocation5], 1 }

</bundles_post_ra>
